<compile_context>
chip_gen: v6e
topology: v6e:2x2x1
jax: 0.10.0
libtpu: 0.0.40
codegen_flags: <defaults>
</compile_context>

<pallas_src>
import numpy as np
import jax
import jax.numpy as jnp
from jax.experimental import pallas as pl
from jax.experimental.pallas import tpu as pltpu

ALPHA, BETA, GAMMA = 0.5, 0.3, 0.2
WIN_SIZE = 11
WIN_SIGMA = 1.5
C1 = (0.01 * 1.0) ** 2   # data_range = 1.0
C2 = (0.03 * 1.0) ** 2


def _gaussian_window(size, sigma):
    coords = np.arange(size, dtype=np.float64) - size // 2
    g = np.exp(-(coords ** 2) / (2.0 * sigma ** 2))
    g /= g.sum()
    return g


_WVEC = [float(v) for v in _gaussian_window(WIN_SIZE, WIN_SIGMA)]


def _band_matrices(H, W):
    """Banded matrices so the separable 'valid' Gaussian blur becomes matmuls."""
    w = _gaussian_window(WIN_SIZE, WIN_SIGMA).astype(np.float32)
    Ho, Wo = H - WIN_SIZE + 1, W - WIN_SIZE + 1
    wrow = np.zeros((W, Wo), np.float32)   # right-multiply: contracts W -> Wo
    for j in range(Wo):
        wrow[j:j + WIN_SIZE, j] = w
    wcol = np.zeros((Ho, H), np.float32)   # left-multiply: contracts H -> Ho
    for i in range(Ho):
        wcol[i, i:i + WIN_SIZE] = w
    return jnp.asarray(wrow), jnp.asarray(wcol)


def _pick_bc_block(BC, H, W, budget_elems=128 * 1024):
    """Largest divisor of BC whose (bc,H,W) f32 block stays well inside VMEM."""
    divs = [d for d in range(1, BC + 1) if BC % d == 0]
    cands = [d for d in divs if d * H * W <= budget_elems and (d < BC or BC == 1)]
    return max(cands) if cands else 1


def _make_kernel(bc, H, W, Ho, Wo, inv_n, inv_m):
    N = 5 * bc   # five moment maps per image plane in the block

    def kernel(recon_ref, x_ref, wrow_ref, wcol_ref, out_ref):
        recon = recon_ref[...].astype(jnp.float32)   # (bc, H, W)
        x = x_ref[...].astype(jnp.float32)

        # MSE / L1 partial sums — same pass, same loaded tiles.
        d = recon - x
        ssq = jnp.sum(d * d)
        sabs = jnp.sum(jnp.abs(d))

        # SSIM on [0,1]-rescaled inputs; blur all five moment maps at once.
        r01 = (recon + 1.0) * 0.5
        x01 = (x + 1.0) * 0.5
        stacked = jnp.concatenate(
            [r01, x01, r01 * r01, x01 * x01, r01 * x01], axis=0)   # (N, H, W)

        wrow = jnp.broadcast_to(wrow_ref[...][None], (N, W, Wo))   # (N, W, Wo)
        wcol = jnp.broadcast_to(wcol_ref[...][None], (N, Ho, H))   # (N, Ho, H)

        # Separable 'valid' Gaussian blur as two batched MXU matmuls.
        blur_w = jnp.einsum('nhw,nwv->nhv', stacked, wrow,
                            preferred_element_type=jnp.float32)     # (N, H, Wo)
        blur = jnp.einsum('noh,nhv->nov', wcol, blur_w,
                          preferred_element_type=jnp.float32)       # (N, Ho, Wo)

        mu1 = blur[0 * bc:1 * bc]
        mu2 = blur[1 * bc:2 * bc]
        e11 = blur[2 * bc:3 * bc]
        e22 = blur[3 * bc:4 * bc]
        e12 = blur[4 * bc:5 * bc]

        mu1_sq = mu1 * mu1
        mu2_sq = mu2 * mu2
        mu12 = mu1 * mu2
        s1 = e11 - mu1_sq
        s2 = e22 - mu2_sq
        s12 = e12 - mu12

        # Merged single division (halves EUP reciprocal pushes).
        num = (2.0 * mu12 + C1) * (2.0 * s12 + C2)
        den = (mu1_sq + mu2_sq + C1) * (s1 + s2 + C2)
        sssim = jnp.sum(num / den)

        # Weighted partial contribution of this block to the total loss.
        partial = (ALPHA * ssq * inv_n
                   + BETA * sabs * inv_n
                   - GAMMA * sssim * inv_m)

        # Lane-dense scalar writeback: one unmasked (8,128) tile per block.
        out_ref[...] = jnp.broadcast_to(partial, (1, 8, 128)).astype(jnp.float32)

    return kernel


def combined_loss(recon, x):
    assert recon.shape == x.shape and recon.ndim == 4
    B, C, H, W = recon.shape
    assert H >= WIN_SIZE and W >= WIN_SIZE, "spatial dims must be >= 11 for SSIM"
    Ho, Wo = H - WIN_SIZE + 1, W - WIN_SIZE + 1
    BC = B * C
    bc = _pick_bc_block(BC, H, W)
    G = BC // bc
    # TODO(synk): also tile H/W (with a 10-pixel halo) if a single (bc,H,W)
    # plane no longer fits VMEM (very large single images, esp. on v7x 64MiB).

    wrow, wcol = _band_matrices(H, W)
    recon3 = recon.reshape(BC, H, W)
    x3 = x.reshape(BC, H, W)

    inv_n = 1.0 / float(BC * H * W)      # normalizer for MSE / L1 means
    inv_m = 1.0 / float(BC * Ho * Wo)    # normalizer for SSIM map mean

    kernel = _make_kernel(bc, H, W, Ho, Wo, inv_n, inv_m)

    partials = pl.pallas_call(
        kernel,
        out_shape=jax.ShapeDtypeStruct((G, 8, 128), jnp.float32),
        grid=(G,),
        in_specs=[
            pl.BlockSpec((bc, H, W), lambda g: (g, 0, 0)),
            pl.BlockSpec((bc, H, W), lambda g: (g, 0, 0)),
            pl.BlockSpec((W, Wo), lambda g: (0, 0)),   # banded row-blur matrix
            pl.BlockSpec((Ho, H), lambda g: (0, 0)),   # banded col-blur matrix
        ],
        out_specs=pl.BlockSpec((1, 8, 128), lambda g: (g, 0, 0)),
        compiler_params=pltpu.CompilerParams(
            dimension_semantics=("parallel",)),
    )(recon3, x3, wrow, wcol)

    # Tiny G-way reduction + the constant GAMMA*1 term from gamma*(1 - ssim).
    return GAMMA + jnp.sum(partials[:, 0, 0])


# ---- pure-JAX reference (sanity check only) ----
def _reference_loss(recon, x):
    B, C, H, W = recon.shape
    Ho, Wo = H - WIN_SIZE + 1, W - WIN_SIZE + 1

    def blur(img):
        acc = sum(img[:, :, :, k:k + Wo] * _WVEC[k] for k in range(WIN_SIZE))
        return sum(acc[:, :, k:k + Ho, :] * _WVEC[k] for k in range(WIN_SIZE))

    d = recon - x
    loss_mse = jnp.mean(d * d)
    loss_l1 = jnp.mean(jnp.abs(d))
    r01, x01 = (recon + 1.0) * 0.5, (x + 1.0) * 0.5
    mu1, mu2 = blur(r01), blur(x01)
    s1 = blur(r01 * r01) - mu1 * mu1
    s2 = blur(x01 * x01) - mu2 * mu2
    s12 = blur(r01 * x01) - mu1 * mu2
    cs = (2 * s12 + C2) / (s1 + s2 + C2)
    ssim_map = ((2 * mu1 * mu2 + C1) / (mu1 * mu1 + mu2 * mu2 + C1)) * cs
    return ALPHA * loss_mse + BETA * loss_l1 + GAMMA * (1.0 - jnp.mean(ssim_map))


if __name__ == "__main__":
    key = jax.random.PRNGKey(0)
    k1, k2 = jax.random.split(key)
    shape = (2, 4, 16, 16)  # batch=2, channels=4, spatial=16 (>= 11 for SSIM window)
    x = jax.random.uniform(k1, shape, jnp.float32, minval=-1.0, maxval=1.0)
    recon = jnp.clip(x + 0.1 * jax.random.normal(k2, shape, jnp.float32), -1.0, 1.0)

    loss = combined_loss(recon, x)
    jax.block_until_ready(loss)

    ref = _reference_loss(recon, x)
    assert abs(float(loss) - float(ref)) < 1e-4, (float(loss), float(ref))
    print("KERNEL_OK")
</pallas_src>

<mosaic_0001>
module attributes {stable_mosaic.version = 11 : i64} {
  func.func @kernel(%arg0: i32, %arg1: memref<4x16x16xf32, #tpu.memory_space<vmem>>, %arg2: memref<4x16x16xf32, #tpu.memory_space<vmem>>, %arg3: memref<16x6xf32, #tpu.memory_space<vmem>>, %arg4: memref<6x16xf32, #tpu.memory_space<vmem>>, %arg5: memref<1x8x128xf32, #tpu.memory_space<vmem>>) attributes {dimension_semantics = [#tpu.dimension_semantics<parallel>], iteration_bounds = array<i64: 2>, scalar_prefetch = 0 : i64, scratch_operands = 0 : i64, tpu.core_type = #tpu.core_type<tc>, window_params = [{transform_indices = @transform_0, window_bounds = array<i64: 4, 16, 16>}, {transform_indices = @transform_1, window_bounds = array<i64: 4, 16, 16>}, {pipeline_mode = #tpu.pipeline_mode<synchronous>, transform_indices = @transform_2, window_bounds = array<i64: 16, 6>}, {pipeline_mode = #tpu.pipeline_mode<synchronous>, transform_indices = @transform_3, window_bounds = array<i64: 6, 16>}, {transform_indices = @transform_4, window_bounds = array<i64: 1, 8, 128>}]} {
    %c0 = arith.constant 0 : index
    %c0_0 = arith.constant 0 : index
    %c0_1 = arith.constant 0 : index
    %0 = vector.load %arg1[%c0, %c0_0, %c0_1] : memref<4x16x16xf32, #tpu.memory_space<vmem>>, vector<4x16x16xf32>
    %c0_2 = arith.constant 0 : index
    %c0_3 = arith.constant 0 : index
    %c0_4 = arith.constant 0 : index
    %1 = vector.load %arg2[%c0_2, %c0_3, %c0_4] : memref<4x16x16xf32, #tpu.memory_space<vmem>>, vector<4x16x16xf32>
    %2 = arith.subf %0, %1 : vector<4x16x16xf32>
    %3 = arith.mulf %2, %2 : vector<4x16x16xf32>
    %4 = vector.shape_cast %3 : vector<4x16x16xf32> to vector<1x4x16x16xf32>
    %cst = arith.constant dense<0.000000e+00> : vector<1xf32>
    %5 = vector.multi_reduction <add>, %4, %cst [1, 2, 3] : vector<1x4x16x16xf32> to vector<1xf32>
    %6 = vector.shape_cast %5 : vector<1xf32> to vector<1x1x1x1xf32>
    %7 = vector.extract %6[0, 0, 0, 0] : f32 from vector<1x1x1x1xf32>
    %8 = math.absf %2 : vector<4x16x16xf32>
    %9 = vector.shape_cast %8 : vector<4x16x16xf32> to vector<1x4x16x16xf32>
    %cst_5 = arith.constant dense<0.000000e+00> : vector<1xf32>
    %10 = vector.multi_reduction <add>, %9, %cst_5 [1, 2, 3] : vector<1x4x16x16xf32> to vector<1xf32>
    %11 = vector.shape_cast %10 : vector<1xf32> to vector<1x1x1x1xf32>
    %12 = vector.extract %11[0, 0, 0, 0] : f32 from vector<1x1x1x1xf32>
    %cst_6 = arith.constant 1.000000e+00 : f32
    %13 = vector.broadcast %cst_6 : f32 to vector<4x16x16xf32>
    %14 = arith.addf %0, %13 : vector<4x16x16xf32>
    %cst_7 = arith.constant 5.000000e-01 : f32
    %15 = vector.broadcast %cst_7 : f32 to vector<4x16x16xf32>
    %16 = arith.mulf %14, %15 : vector<4x16x16xf32>
    %cst_8 = arith.constant 1.000000e+00 : f32
    %17 = vector.broadcast %cst_8 : f32 to vector<4x16x16xf32>
    %18 = arith.addf %1, %17 : vector<4x16x16xf32>
    %cst_9 = arith.constant 5.000000e-01 : f32
    %19 = vector.broadcast %cst_9 : f32 to vector<4x16x16xf32>
    %20 = arith.mulf %18, %19 : vector<4x16x16xf32>
    %21 = arith.mulf %16, %16 : vector<4x16x16xf32>
    %22 = arith.mulf %20, %20 : vector<4x16x16xf32>
    %23 = arith.mulf %16, %20 : vector<4x16x16xf32>
    %24 = tpu.concatenate %16, %20, %21, %22, %23 in 0 : vector<4x16x16xf32>, vector<4x16x16xf32>, vector<4x16x16xf32>, vector<4x16x16xf32>, vector<4x16x16xf32> -> vector<20x16x16xf32>
    %c0_10 = arith.constant 0 : index
    %c0_11 = arith.constant 0 : index
    %25 = vector.load %arg3[%c0_10, %c0_11] : memref<16x6xf32, #tpu.memory_space<vmem>>, vector<16x6xf32>
    %26 = vector.shape_cast %25 : vector<16x6xf32> to vector<1x16x6xf32>
    %27 = vector.shape_cast %26 : vector<1x16x6xf32> to vector<1x16x6xf32>
    %28 = vector.broadcast %27 : vector<1x16x6xf32> to vector<20x16x6xf32>
    %c0_12 = arith.constant 0 : index
    %c0_13 = arith.constant 0 : index
    %29 = vector.load %arg4[%c0_12, %c0_13] : memref<6x16xf32, #tpu.memory_space<vmem>>, vector<6x16xf32>
    %30 = vector.shape_cast %29 : vector<6x16xf32> to vector<1x6x16xf32>
    %31 = vector.shape_cast %30 : vector<1x6x16xf32> to vector<1x6x16xf32>
    %32 = vector.broadcast %31 : vector<1x6x16xf32> to vector<20x6x16xf32>
    "tpu.trace_start"() <{level = 10 : i32, message = "nhw,nwv->nhv"}> : () -> ()
    %cst_14 = arith.constant dense<0.000000e+00> : vector<20x16x6xf32>
    %33 = tpu.matmul %24, %28, %cst_14 {dimension_numbers = #tpu.dot_dimension_numbers<[2], [1], [1], [2], [0, 0, 0, 1, 1, 2], [0], [0]>} : vector<20x16x16xf32>, vector<20x16x6xf32>, vector<20x16x6xf32> -> vector<20x16x6xf32>
    "tpu.trace_stop"() : () -> ()
    "tpu.trace_start"() <{level = 10 : i32, message = "noh,nhv->nov"}> : () -> ()
    %cst_15 = arith.constant dense<0.000000e+00> : vector<20x6x6xf32>
    %34 = tpu.matmul %32, %33, %cst_15 {dimension_numbers = #tpu.dot_dimension_numbers<[2], [1], [1], [2], [0, 0, 0, 1, 1, 2], [0], [0]>} : vector<20x6x16xf32>, vector<20x16x6xf32>, vector<20x6x6xf32> -> vector<20x6x6xf32>
    "tpu.trace_stop"() : () -> ()
    %35 = vector.extract_strided_slice %34 {offsets = [0, 0, 0], sizes = [4, 6, 6], strides = [1, 1, 1]} : vector<20x6x6xf32> to vector<4x6x6xf32>
    %36 = vector.extract_strided_slice %34 {offsets = [4, 0, 0], sizes = [4, 6, 6], strides = [1, 1, 1]} : vector<20x6x6xf32> to vector<4x6x6xf32>
    %37 = vector.extract_strided_slice %34 {offsets = [8, 0, 0], sizes = [4, 6, 6], strides = [1, 1, 1]} : vector<20x6x6xf32> to vector<4x6x6xf32>
    %38 = vector.extract_strided_slice %34 {offsets = [12, 0, 0], sizes = [4, 6, 6], strides = [1, 1, 1]} : vector<20x6x6xf32> to vector<4x6x6xf32>
    %39 = vector.extract_strided_slice %34 {offsets = [16, 0, 0], sizes = [4, 6, 6], strides = [1, 1, 1]} : vector<20x6x6xf32> to vector<4x6x6xf32>
    %40 = arith.mulf %35, %35 : vector<4x6x6xf32>
    %41 = arith.mulf %36, %36 : vector<4x6x6xf32>
    %42 = arith.mulf %35, %36 : vector<4x6x6xf32>
    %43 = arith.subf %37, %40 : vector<4x6x6xf32>
    %44 = arith.subf %38, %41 : vector<4x6x6xf32>
    %45 = arith.subf %39, %42 : vector<4x6x6xf32>
    %cst_16 = arith.constant 2.000000e+00 : f32
    %46 = vector.broadcast %cst_16 : f32 to vector<4x6x6xf32>
    %47 = arith.mulf %46, %42 : vector<4x6x6xf32>
    %cst_17 = arith.constant 9.99999974E-5 : f32
    %48 = vector.broadcast %cst_17 : f32 to vector<4x6x6xf32>
    %49 = arith.addf %47, %48 : vector<4x6x6xf32>
    %cst_18 = arith.constant 2.000000e+00 : f32
    %50 = vector.broadcast %cst_18 : f32 to vector<4x6x6xf32>
    %51 = arith.mulf %50, %45 : vector<4x6x6xf32>
    %cst_19 = arith.constant 8.99999984E-4 : f32
    %52 = vector.broadcast %cst_19 : f32 to vector<4x6x6xf32>
    %53 = arith.addf %51, %52 : vector<4x6x6xf32>
    %54 = arith.mulf %49, %53 : vector<4x6x6xf32>
    %55 = arith.addf %40, %41 : vector<4x6x6xf32>
    %cst_20 = arith.constant 9.99999974E-5 : f32
    %56 = vector.broadcast %cst_20 : f32 to vector<4x6x6xf32>
    %57 = arith.addf %55, %56 : vector<4x6x6xf32>
    %58 = arith.addf %43, %44 : vector<4x6x6xf32>
    %cst_21 = arith.constant 8.99999984E-4 : f32
    %59 = vector.broadcast %cst_21 : f32 to vector<4x6x6xf32>
    %60 = arith.addf %58, %59 : vector<4x6x6xf32>
    %61 = arith.mulf %57, %60 : vector<4x6x6xf32>
    %62 = arith.divf %54, %61 : vector<4x6x6xf32>
    %63 = vector.shape_cast %62 : vector<4x6x6xf32> to vector<1x4x6x6xf32>
    %cst_22 = arith.constant dense<0.000000e+00> : vector<1xf32>
    %64 = vector.multi_reduction <add>, %63, %cst_22 [1, 2, 3] : vector<1x4x6x6xf32> to vector<1xf32>
    %65 = vector.shape_cast %64 : vector<1xf32> to vector<1x1x1x1xf32>
    %66 = vector.extract %65[0, 0, 0, 0] : f32 from vector<1x1x1x1xf32>
    %cst_23 = arith.constant 5.000000e-01 : f32
    %67 = arith.mulf %cst_23, %7 : f32
    %cst_24 = arith.constant 4.8828125E-4 : f32
    %68 = arith.mulf %67, %cst_24 : f32
    %cst_25 = arith.constant 3.000000e-01 : f32
    %69 = arith.mulf %cst_25, %12 : f32
    %cst_26 = arith.constant 4.8828125E-4 : f32
    %70 = arith.mulf %69, %cst_26 : f32
    %71 = arith.addf %68, %70 : f32
    %cst_27 = arith.constant 2.000000e-01 : f32
    %72 = arith.mulf %cst_27, %66 : f32
    %cst_28 = arith.constant 0.00347222225 : f32
    %73 = arith.mulf %72, %cst_28 : f32
    %74 = arith.subf %71, %73 : f32
    %75 = vector.broadcast %74 : f32 to vector<1x8x128xf32>
    %c0_29 = arith.constant 0 : index
    %c0_30 = arith.constant 0 : index
    %c0_31 = arith.constant 0 : index
    %76 = vector.load %arg5[%c0_29, %c0_30, %c0_31] : memref<1x8x128xf32, #tpu.memory_space<vmem>>, vector<1x8x128xf32>
    tpu.vector_store %arg5[%c0_29, %c0_30, %c0_31], %75 {strides = array<i32>} : memref<1x8x128xf32, #tpu.memory_space<vmem>>, vector<1x8x128xf32>,
    return
  }
  func.func @transform_0(%arg0: i32) -> (i32, i32, i32) {
    %c0_i32 = arith.constant 0 : i32
    %c0_i32_0 = arith.constant 0 : i32
    %c0_i32_1 = arith.constant 0 : i32
    return %arg0, %c0_i32, %c0_i32_0 : i32, i32, i32
  }
  func.func @transform_1(%arg0: i32) -> (i32, i32, i32) {
    %c0_i32 = arith.constant 0 : i32
    %c0_i32_0 = arith.constant 0 : i32
    %c0_i32_1 = arith.constant 0 : i32
    return %arg0, %c0_i32, %c0_i32_0 : i32, i32, i32
  }
  func.func @transform_2(%arg0: i32) -> (i32, i32) {
    %c0_i32 = arith.constant 0 : i32
    %c0_i32_0 = arith.constant 0 : i32
    %c0_i32_1 = arith.constant 0 : i32
    return %c0_i32, %c0_i32_0 : i32, i32
  }
  func.func @transform_3(%arg0: i32) -> (i32, i32) {
    %c0_i32 = arith.constant 0 : i32
    %c0_i32_0 = arith.constant 0 : i32
    %c0_i32_1 = arith.constant 0 : i32
    return %c0_i32, %c0_i32_0 : i32, i32
  }
  func.func @transform_4(%arg0: i32) -> (i32, i32, i32) {
    %c0_i32 = arith.constant 0 : i32
    %c0_i32_0 = arith.constant 0 : i32
    %c0_i32_1 = arith.constant 0 : i32
    return %arg0, %c0_i32, %c0_i32_0 : i32, i32, i32
  }
}

</mosaic_0001>

<bundles_post_ra>
// kernel: tpu_custom_call.1
= control target key start
LH: loop header
LB: loop body
LE: loop exit
PB: predicated region body
PF: predicated region fallthrough
CT: control target
= control target key end

     0   :  { %s5044_s0 = inlined_call_operand.hbm [shape: f32[8,16,16], index: 0, kind: input, shape index: {}]   ;;  %s5045_s1 = inlined_call_operand.hbm [shape: f32[8,16,16], index: 1, kind: input, shape index: {}]   ;;  %s5046_s2 = inlined_call_operand.vmem [shape: f32[16,6], index: 2, kind: input, shape index: {}]   ;;  %s5047_s3 = inlined_call_operand.vmem [shape: f32[6,16], index: 3, kind: input, shape index: {}]   ;;  %s5048_s4 = inlined_call_operand.hbm [shape: f32[2,8,128], index: 4, kind: output, shape index: {}]  }
   0x1   :  { %5051 = sst [smem:[#allocation11_spill]] %s5044_s0 }
   0x2   :  { %5052 = sst [smem:[#allocation12_spill]] %s5045_s1 }
   0x3   :  { %9 = vsyncpa [#allocation3], 0 }
   0x4   :  { %11 = vsyncpa [#allocation3 + $0x1], 0 }
   0x5   :  { %12 = vsyncpa [#allocation6], 0 }
   0x6   :  { %14 = vsyncpa [#allocation6 + $0x1], 0 }
   0x7   :  { %15 = vsyncpa [#allocation4], 0 }
   0x8   :  { %17 = vsyncpa [#allocation4 + $0x1], 0  ;;  %s4367_s15 = smov 0   ;;  %s4369_s16 = smov 0  }
   0x9   :  { %s4371_s17 = smov 0   ;;  %s4373_s18 = smov 0  }
   0xa LB: > { %s4388_s19 = sadd.s32 4294967295, %s4333_s18   ;;  %s3637_s20 = sadd.s32 4294967294, %s4333_s18   ;;  %s4333_s18 = sphi %s4373_s18, %s5068_s18   ;;  %s4329_s17 = sphi %s4371_s17, %s5067_s17   ;;  %s4325_s16 = sphi %s4369_s16, %s5066_s16   ;;  %s4321_s15 = sphi %s4367_s15, %s5065_s15  }
   0xb   : > { %s4392_s21 = sadd.s32 1, %s4333_s18   ;;  %s30_s22 = sadd.s32 1, %s4329_s17 }
   0xc   : > { %s27_s23 = ssub.s32 %s4333_s18, %s4392_s21  ;;  %p37_p0 = scmp.ne.s32.totalorder %s4329_s17, %s4325_s16 }
   0xd   : > { %p28_p1 = scmp.eq.s32.totalorder %s27_s23, 0  ;;  %p38_p2 = scmp.eq.s32.totalorder %s4333_s18, 0 }
   0xe   : > { %p43_p3 = scmp.ne.s32.totalorder %s4325_s16, %s4321_s15  ;;  %p44_p4 = scmp.eq.s32.totalorder %s4388_s19, 0 }
   0xf   : > { %s4404_s24 = scalar_select %p28_p1, %s4329_s17, %s30_s22  }
  0x10   : > { %p4406_p5 = por %p38_p2, %p37_p0  ;;  %p4410_p6 = por %p44_p4, %p43_p3 }
  0x11   : > { %p135_p7 = scmp.eq.s32.totalorder %s4388_s19, 1  ;;  %p141_p8 = scmp.eq.s32.totalorder %s3637_s20, 1 }
  0x12   : > { %s5054_s26 = scalar_select %p4410_p6, 1, 0 }
  0x13   : > { %p4163_p10 = scmp.lt.s32.totalorder %s4333_s18, 2  ;;  %p4417_p11 = por %p135_p7, %p37_p0 }
  0x14   : > { %p4421_p12 = por %p141_p8, %p43_p3  ;;  %s4426_s29 = sand.u32 1, %s4329_s17  }
  0x15   : > { %s5055_s27 = scalar_select %p4417_p11, 1, 0 }
  0x16   : > { %s5056_s28 = scalar_select %p4421_p12, 1, 0 }
  0x17   : > { %s3717_s30 = sshll.u32 %s4333_s18, 10  ;;  %s3640_s5 = sshll.u32 %s4426_s29, 6 }
  0x18   : > { %s5057_s0 = sld [smem:[#allocation11_spill]]  ;;  %s171_s9 = scalar_lea.vmem [#allocation2], %s3640_s5 }
  0x19   : > { %s179_s10 = sshll.u32 %s171_s9, 4  ;;  %p4441_p13 = pnand %p4163_p10, %p4406_p5  ;;  %s4445_s10 = int_to_ptr.vmem [resolvable:$true] %s179_s10 }
  0x1a   : > { %s168_s12 = scalar_lea.sflag [#allocation3], %s4426_s29 }
  0x1b   : > { %p4211_p1 = pneg %p4441_p13 }
  0x1e   : > { %s4435_s8 = scalar_lea.hbm %s5057_s0, %s3717_s30  ;;  %s4214_s22 = scalar_lea.hbm %s5057_s0, 2048 }
  0x1f   : > { %s4209_s13 = scalar_lea.hbm %s4435_s8, 1024  ;;  %p4215_p4 = scmp.lt.s32.totalorder %s4435_s8, %s5057_s0 }
  0x20   : > { %p4210_p0 = scmp.ne.s32.totalorder %s4435_s8, %s4209_s13  ;;  %p4216_p5 = scmp.lt.s32.totalorder %s4214_s22, %s4209_s13 }
  0x22   : > { %p4212_p2 = pnand %p4211_p1, %p4210_p0  ;;  %p4217_p7 = por %p4216_p5, %p4215_p4 }
  0x24   : > { %p4213_p3 = pneg %p4212_p2 }
  0x26   : > { %p4218_p8 = pnand %p4217_p7, %p4213_p3 }
  0x28   : > { %4221 = shalt.err (!%p4218_p8)
}
  0x29   : > { %s4222_s6 = scalar_lea.vmem %s4445_s10, 1024  ;;  %s4335_s7 = smov [#allocation2]  }
  0x2a   : > { %p4223_p10 = scmp.ne.s32.totalorder %s4445_s10, %s4222_s6  ;;  %s4227_s9 = sshll.u32 %s4335_s7, 4  ;;  %s4228_s9 = int_to_ptr.vmem [resolvable:$false] %s4227_s9 }
  0x2b   : > { %s4229_s14 = scalar_lea.vmem %s4228_s9, 2048  ;;  %p4230_p9 = scmp.lt.s32.totalorder %s4445_s10, %s4228_s9 }
  0x2c   : > { %p4225_p0 = pnand %p4223_p10, %p4211_p1  ;;  %p4231_p12 = scmp.lt.s32.totalorder %s4229_s14, %s4222_s6 }
  0x2e   : > { %p4226_p2 = pneg %p4225_p0  ;;  %p4232_p11 = por %p4231_p12, %p4230_p9 }
  0x30   : > { %p4233_p4 = pnand %p4232_p11, %p4226_p2 }
  0x32   : > { %4236 = shalt.err (!%p4233_p4)
}
  0x33   : > { %s4336_s13 = smov 128   ;;  %s4337_s20 = smov 8  }
  0x34   : > { %4155 = dma.hbm_to_vmem [thread:$0]  (!%p4441_p13), %s4435_s8, 1024, %s4445_s10, %s168_s12, %s4336_s13, %s4336_s13, %s4337_s20  }
  0x35   : > { %p3648_p9 = scmp.ge.s32.totalorder %s4333_s18, 1  ;;  %p209_p11 = scmp.lt.s32.totalorder %s4333_s18, 3 }
  0x36   : > { %s5060_s1 = sld [smem:[#allocation12_spill]]  ;;  %s193_s7 = scalar_lea.vmem [#allocation5], %s3640_s5 }
  0x37   : > { %p4479_p12 = pnand %p3648_p9, %p209_p11  ;;  %s201_s9 = sshll.u32 %s193_s7, 4  ;;  %s4492_s9 = int_to_ptr.vmem [resolvable:$true] %s201_s9 }
  0x38   : > { %s190_s8 = scalar_lea.sflag [#allocation6], %s4426_s29 }
  0x3c   : > { %s4488_s6 = scalar_lea.hbm %s5060_s1, %s3717_s30  ;;  %s4242_s30 = scalar_lea.hbm %s5060_s1, 2048 }
  0x3d   : > { %s4237_s10 = scalar_lea.hbm %s4488_s6, 1024  ;;  %p4243_p8 = scmp.lt.s32.totalorder %s4488_s6, %s5060_s1 }
  0x3e   : > { %p4238_p3 = scmp.ne.s32.totalorder %s4488_s6, %s4237_s10  ;;  %p4244_p10 = scmp.lt.s32.totalorder %s4242_s30, %s4237_s10 }
  0x40   : > { %p4240_p5 = pnand %p4238_p3, %p4211_p1  ;;  %p4245_p0 = por %p4244_p10, %p4243_p8 }
  0x42   : > { %p4241_p7 = pneg %p4240_p5 }
  0x44   : > { %p4246_p2 = pnand %p4245_p0, %p4241_p7 }
  0x46   : > { %4249 = shalt.err (!%p4246_p2)
}
  0x47   : > { %s4250_s29 = scalar_lea.vmem %s4492_s9, 1024  ;;  %s4338_s5 = smov [#allocation5]  }
  0x48   : > { %p4251_p4 = scmp.ne.s32.totalorder %s4492_s9, %s4250_s29  ;;  %s4255_s7 = sshll.u32 %s4338_s5, 4  ;;  %s4256_s7 = int_to_ptr.vmem [resolvable:$false] %s4255_s7 }
  0x49   : > { %s4257_s12 = scalar_lea.vmem %s4256_s7, 2048  ;;  %p4258_p3 = scmp.lt.s32.totalorder %s4492_s9, %s4256_s7 }
  0x4a   : > { %p4253_p9 = pnand %p4251_p4, %p4211_p1  ;;  %p4259_p5 = scmp.lt.s32.totalorder %s4257_s12, %s4250_s29 }
  0x4c   : > { %p4254_p11 = pneg %p4253_p9  ;;  %p4260_p6 = por %p4259_p5, %p4258_p3 }
  0x4e   : > { %p4261_p8 = pnand %p4260_p6, %p4254_p11 }
  0x50   : > { %4264 = shalt.err (!%p4261_p8)
}
  0x51   : > { %4158 = dma.hbm_to_vmem [thread:$0]  (!%p4441_p13), %s4488_s6, 1024, %s4492_s9, %s190_s8, %s4336_s13, %s4336_s13, %s4337_s20  }
  0x52   : > { %213 = sbr.rel (%p4479_p12) target bundleno = 777 (0x309), region = 36  ;;  %s4523_s10 = sand.u32 (!%p4479_p12), 1, %s4325_s16  }
  0x53   : > { %s3649_s14 = sshll.u32 (!%p4479_p12), %s4523_s10, 6  ;;  %s216_s30 = scalar_lea.sflag (!%p4479_p12), [#allocation3], %s4523_s10 }
  0x54   : > { %s4527_s23 = scalar_lea.vmem (!%p4479_p12), [#allocation2], %s3649_s14  ;;  %p5061_p6 = scmp.ne.s32.totalorder (!%p4479_p12), %s5054_s26, 0 }
  0x57   : > { %4308 = dma.done.wait (%p5061_p6), %s216_s30, 1024  }
  0x58   : > { %4310 = vsyncadd (%p5061_p6), %s216_s30, 4294966272  ;;  %s225_s11 = scalar_lea.sflag [#allocation6], %s4523_s10  ;;  %s4534_s13 = scalar_lea.vmem [#allocation5], %s3649_s14 }
  0x59   : > { %4312 = dma.done.wait (%p5061_p6), %s225_s11, 1024  }
  0x5a   : > { %4314 = vsyncadd (%p5061_p6), %s225_s11, 4294966272  ;;  %v4543_v0 = vld [vmem:[%s5046_s2 + $0x8] sm:$0xff]  ;;  %v4548_v1 = vld [vmem:[%s5046_s2] sm:$0xff]  ;;  %vm292_vm0 = vcmask 130048   ;;  %vm4340_vm1 = vmmov 0   ;;  %vm3503_vm2 = vcmask 46080  }
  0x5b   : > { %v260_v2 = vld [vmem:[%s4527_s23] sm:$0xff]  ;;  %3860 = vmatprep.subr.mxu0 %v4543_v0  ;;  %3867 = vmatprep.subr.mxu1 %v4543_v0  ;;  %v262_v5 = vld [vmem:[%s4527_s23 + $0x10] sm:$0xff]  ;;  %v261_v10 = vld [vmem:[%s4527_s23 + $0x8] sm:$0xff]  ;;  %s3651_s14 = sshll.u32 %s4523_s10, 3  ;;  %s3713_s20 = sshll.u32 %s4388_s19, 7 }
  0x5c   : > { %v268_v3 = vld [vmem:[%s4534_s13] sm:$0xff]  ;;  %v349_v4 = vadd.f32 1.0, %v260_v2  ;;  %v270_v6 = vld [vmem:[%s4534_s13 + $0x10] sm:$0xff]  ;;  %3861 = vmatpush3.msra.mxu0 %v4543_v0  ;;  %3868 = vmatpush3.msra.mxu1 %v4543_v0  ;;  %v351_v9 = vadd.f32 1.0, %v262_v5  ;;  %v269_v11 = vld [vmem:[%s4534_s13 + $0x8] sm:$0xff]  ;;  %v350_v14 = vadd.f32 1.0, %v261_v10  ;;  %s5007_s1 = scalar_lea.hbm %s5048_s4, %s3713_s20 }
  0x5d   : > { %v4558_v7 = vsub.f32 %v260_v2, %v268_v3  ;;  %v4560_v8 = vsub.f32 %v262_v5, %v270_v6  ;;  %3862 = vmatprep.subr.mxu0 %v4548_v1  ;;  %3869 = vmatprep.subr.mxu1 %v4548_v1  ;;  %v4568_v13 = vsub.f32 %v261_v10, %v269_v11  ;;  %v263_v15 = vld [vmem:[%s4527_s23 + $0x18] sm:$0xff]  ;;  %v264_v16 = vld [vmem:[%s4527_s23 + $0x20] sm:$0xff]  ;;  %v4582_v19 = vld [vmem:[%s4527_s23 + $0x30] sm:$0xff]  ;;  %v365_v33 = vadd.f32 1.0, %v268_v3  ;;  %s257_s6 = scalar_lea.vmem [#allocation7], %s3651_s14  ;;  %p5062_p1 = scmp.ne.s32.totalorder %s5055_s27, 0 }
  0x5e   : > { %v4566_v12 = vmul.f32 0.5, %v349_v4  ;;  %3863 = vmatpush3.msra.mxu0 %v4548_v1  ;;  %3870 = vmatpush3.msra.mxu1 %v4548_v1  ;;  %v4576_v17 = vmul.f32 0.5, %v351_v9  ;;  %v4578_v18 = vmul.f32 0.5, %v350_v14  ;;  %v4585_v20 = vld [vmem:[%s4527_s23 + $0x28] sm:$0xff]  ;;  %v4588_v21 = vld [vmem:[%s4527_s23 + $0x38] sm:$0xff]  ;;  %v352_v24 = vadd.f32 1.0, %v263_v15 }
  0x5f   : > { %3874 = vmatprep.subr.mxu0 %v4543_v0  ;;  %v271_v22 = vld [vmem:[%s4534_s13 + $0x18] sm:$0xff]  ;;  %3881 = vmatprep.subr.mxu1 %v4543_v0  ;;  %v353_v25 = vadd.f32 1.0, %v264_v16  ;;  %v355_v26 = vadd.f32 1.0, %v4582_v19  ;;  %v354_v27 = vadd.f32 1.0, %v4585_v20  ;;  %v356_v28 = vadd.f32 1.0, %v4588_v21  ;;  %v272_v34 = vld [vmem:[%s4534_s13 + $0x20] sm:$0xff] }
  0x60   : > { %3864 = vmatprep.mubr.msk.f32.mxu0 %vm292_vm0, %v4566_v12  ;;  %3871 = vmatprep.mubr.msk.f32.mxu1 %vm292_vm0, %v4576_v17  ;;  %v4596_v23 = vsub.f32 %v263_v15, %v271_v22  ;;  %v4602_v29 = vmul.f32 0.5, %v352_v24  ;;  %v367_v36 = vadd.f32 1.0, %v270_v6  ;;  %v4618_v37 = vsub.f32 %v264_v16, %v272_v34  ;;  %v4632_v41 = vld [vmem:[%s4534_s13 + $0x30] sm:$0xff]  ;;  %v4640_v43 = vld [vmem:[%s4534_s13 + $0x28] sm:$0xff]  ;;  %v4643_v44 = vld [vmem:[%s4534_s13 + $0x38] sm:$0xff]  ;;  %s3544_s9 = sshll.u32 %s257_s6, 4  ;;  %s3545_s9 = int_to_ptr.vmem [resolvable:$true] %s3544_s9 }
  0x61   : > { %3865 = vmatmul.mubr.msk.f32.vlgmr.msra.gmra.mxu0 %vm292_vm0, %v4578_v18  ;;  %v4606_v30 = vmul.f32 0.5, %v353_v25  ;;  %v4608_v31 = vmul.f32 0.5, %v355_v26  ;;  %v4610_v32 = vmul.f32 0.5, %v354_v27  ;;  %v4615_v35 = vmul.f32 0.5, %v356_v28 }
  0x62   : > { %3875 = vmatpush3.msra.mxu0 %v4543_v0  ;;  %3872 = vmatmul.mubr.msk.f32.vlgmr.msra.gmra.mxu1 %vm292_vm0, %v4602_v29  ;;  %v366_v38 = vadd.f32 1.0, %v269_v11  ;;  %v368_v39 = vadd.f32 1.0, %v271_v22  ;;  %v4629_v40 = vmul.f32 0.5, %v365_v33  ;;  %v4637_v42 = vmul.f32 0.5, %v367_v36 }
  0x63   : > { %3876 = vmatprep.subr.mxu0 %v4548_v1  ;;  %3882 = vmatpush3.msra.mxu1 %v4543_v0  ;;  %v369_v47 = vadd.f32 1.0, %v272_v34  ;;  %v371_v48 = vadd.f32 1.0, %v4632_v41  ;;  %v370_v49 = vadd.f32 1.0, %v4640_v43  ;;  %v372_v50 = vadd.f32 1.0, %v4643_v44 }
  0x64   : > { %3877 = vmatpush3.msra.mxu0 %v4548_v1  ;;  %3878 = vmatprep.mubr.msk.f32.mxu0 %vm292_vm0, %v4606_v30  ;;  %v4647_v45 = vmul.f32 0.5, %v366_v38  ;;  %v4649_v46 = vmul.f32 0.5, %v368_v39  ;;  %v381_v55 = vmul.f32 %v4566_v12, %v4566_v12  ;;  %v383_v56 = vmul.f32 %v4576_v17, %v4576_v17 }
  0x65   : > { %3888 = vmatprep.subr.mxu0 %v4543_v0  ;;  %3883 = vmatprep.subr.mxu1 %v4548_v1  ;;  %v4666_v51 = vmul.f32 0.5, %v369_v47  ;;  %v4670_v52 = vmul.f32 0.5, %v371_v48  ;;  %v4674_v53 = vmul.f32 0.5, %v370_v49  ;;  %v4676_v54 = vmul.f32 0.5, %v372_v50 }
  0x66   : > { %3885 = vmatprep.mubr.msk.f32.mxu1 %vm292_vm0, %v4608_v31  ;;  %3884 = vmatpush3.msra.mxu1 %v4548_v1  ;;  %v382_v57 = vmul.f32 %v4578_v18, %v4578_v18  ;;  %v384_v58 = vmul.f32 %v4602_v29, %v4602_v29  ;;  %v385_v59 = vmul.f32 %v4606_v30, %v4606_v30 }
  0x67   : > { %3879 = vmatmul.mubr.msk.f32.vlgmr.msra.gmra.mxu0 %vm292_vm0, %v4610_v32  ;;  %3886 = vmatmul.mubr.msk.f32.vlgmr.msra.gmra.mxu1 %vm292_vm0, %v4615_v35  ;;  %v387_v60 = vmul.f32 %v4608_v31, %v4608_v31  ;;  %v386_v61 = vmul.f32 %v4610_v32, %v4610_v32  ;;  %v388_v62 = vmul.f32 %v4615_v35, %v4615_v35 }
  0x68   : > { %3895 = vmatprep.subr.mxu1 %v4543_v0  ;;  %3889 = vmatpush3.msra.mxu0 %v4543_v0  ;;  %v389_v63 = vmul.f32 %v4629_v40, %v4629_v40  ;;  %v391_v2 = vmul.f32 %v4637_v42, %v4637_v42  ;;  %v390_v3 = vmul.f32 %v4647_v45, %v4647_v45 }
  0x69   : > { %3896 = vmatpush3.msra.mxu1 %v4543_v0  ;;  %3890 = vmatprep.subr.mxu0 %v4548_v1  ;;  %v392_v4 = vmul.f32 %v4649_v46, %v4649_v46  ;;  %v393_v5 = vmul.f32 %v4666_v51, %v4666_v51  ;;  %v395_v6 = vmul.f32 %v4670_v52, %v4670_v52 }
  0x6a   : > { %3897 = vmatprep.subr.mxu1 %v4548_v1  ;;  %3891 = vmatpush3.msra.mxu0 %v4548_v1  ;;  %v394_v9 = vmul.f32 %v4674_v53, %v4674_v53  ;;  %v396_v10 = vmul.f32 %v4676_v54, %v4676_v54  ;;  %v397_v11 = vmul.f32 %v4629_v40, %v4566_v12 }
  0x6b   : > { %3892 = vmatprep.mubr.msk.f32.mxu0 %vm292_vm0, %v4629_v40  ;;  %3898 = vmatpush3.msra.mxu1 %v4548_v1  ;;  %v399_v14 = vmul.f32 %v4637_v42, %v4576_v17  ;;  %v398_v15 = vmul.f32 %v4647_v45, %v4578_v18  ;;  %v400_v16 = vmul.f32 %v4649_v46, %v4602_v29 }
  0x6c   : > { %3899 = vmatprep.mubr.msk.f32.mxu1 %vm292_vm0, %v4637_v42  ;;  %3893 = vmatmul.mubr.msk.f32.vlgmr.msra.gmra.mxu0 %vm292_vm0, %v4647_v45  ;;  %v401_v12 = vmul.f32 %v4666_v51, %v4606_v30  ;;  %v403_v17 = vmul.f32 %v4670_v52, %v4608_v31  ;;  %v402_v18 = vmul.f32 %v4674_v53, %v4610_v32 }
  0x6d   : > { %3900 = vmatmul.mubr.msk.f32.vlgmr.msra.gmra.mxu1 %vm292_vm0, %v4649_v46  ;;  %3902 = vmatprep.subr.mxu0 %v4543_v0  ;;  %v404_v22 = vmul.f32 %v4676_v54, %v4615_v35 }
  0x6e   : > { %3909 = vmatprep.subr.mxu1 %v4543_v0  ;;  %3903 = vmatpush3.msra.mxu0 %v4543_v0 }
  0x6f   : > { %3910 = vmatpush3.msra.mxu1 %v4543_v0  ;;  %3904 = vmatprep.subr.mxu0 %v4548_v1 }
  0x70   : > { %3911 = vmatprep.subr.mxu1 %v4548_v1  ;;  %3905 = vmatpush3.msra.mxu0 %v4548_v1 }
  0x71   : > { %3906 = vmatprep.mubr.msk.f32.mxu0 %vm292_vm0, %v4666_v51  ;;  %3912 = vmatpush3.msra.mxu1 %v4548_v1 }
  0x72   : > { %3913 = vmatprep.mubr.msk.f32.mxu1 %vm292_vm0, %v4670_v52  ;;  %3907 = vmatmul.mubr.msk.f32.vlgmr.msra.gmra.mxu0 %vm292_vm0, %v4674_v53 }
  0x73   : > { %3914 = vmatmul.mubr.msk.f32.vlgmr.msra.gmra.mxu1 %vm292_vm0, %v4676_v54  ;;  %3916 = vmatprep.subr.mxu0 %v4543_v0 }
  0x74   : > { %3923 = vmatprep.subr.mxu1 %v4543_v0  ;;  %3917 = vmatpush3.msra.mxu0 %v4543_v0 }
  0x75   : > { %3924 = vmatpush3.msra.mxu1 %v4543_v0  ;;  %3918 = vmatprep.subr.mxu0 %v4548_v1 }
  0x76   : > { %3925 = vmatprep.subr.mxu1 %v4548_v1  ;;  %3919 = vmatpush3.msra.mxu0 %v4548_v1 }
  0x77   : > { %3920 = vmatprep.mubr.msk.f32.mxu0 %vm292_vm0, %v381_v55  ;;  %3926 = vmatpush3.msra.mxu1 %v4548_v1 }
  0x78   : > { %3927 = vmatprep.mubr.msk.f32.mxu1 %vm292_vm0, %v383_v56  ;;  %3921 = vmatmul.mubr.msk.f32.vlgmr.msra.gmra.mxu0 %vm292_vm0, %v382_v57 }
  0x79   : > { %3928 = vmatmul.mubr.msk.f32.vlgmr.msra.gmra.mxu1 %vm292_vm0, %v384_v58  ;;  %3930 = vmatprep.subr.mxu0 %v4543_v0 }
  0x7a   : > { %3937 = vmatprep.subr.mxu1 %v4543_v0  ;;  %3931 = vmatpush3.msra.mxu0 %v4543_v0 }
  0x7b   : > { %3938 = vmatpush3.msra.mxu1 %v4543_v0  ;;  %3932 = vmatprep.subr.mxu0 %v4548_v1 }
  0x7c   : > { %3939 = vmatprep.subr.mxu1 %v4548_v1  ;;  %3933 = vmatpush3.msra.mxu0 %v4548_v1 }
  0x7d   : > { %3934 = vmatprep.mubr.msk.f32.mxu0 %vm292_vm0, %v385_v59  ;;  %3940 = vmatpush3.msra.mxu1 %v4548_v1 }
  0x7e   : > { %3941 = vmatprep.mubr.msk.f32.mxu1 %vm292_vm0, %v387_v60  ;;  %3935 = vmatmul.mubr.msk.f32.vlgmr.msra.gmra.mxu0 %vm292_vm0, %v386_v61 }
  0x7f   : > { %3942 = vmatmul.mubr.msk.f32.vlgmr.msra.gmra.mxu1 %vm292_vm0, %v388_v62  ;;  %3944 = vmatprep.subr.mxu0 %v4543_v0 }
  0x80   : > { %3951 = vmatprep.subr.mxu1 %v4543_v0  ;;  %3945 = vmatpush3.msra.mxu0 %v4543_v0 }
  0x81   : > { %3952 = vmatpush3.msra.mxu1 %v4543_v0  ;;  %3946 = vmatprep.subr.mxu0 %v4548_v1 }
  0x82   : > { %3953 = vmatprep.subr.mxu1 %v4548_v1  ;;  %3947 = vmatpush3.msra.mxu0 %v4548_v1 }
  0x83   : > { %3948 = vmatprep.mubr.msk.f32.mxu0 %vm292_vm0, %v389_v63  ;;  %3954 = vmatpush3.msra.mxu1 %v4548_v1 }
  0x84   : > { %3955 = vmatprep.mubr.msk.f32.mxu1 %vm292_vm0, %v391_v2  ;;  %3949 = vmatmul.mubr.msk.f32.vlgmr.msra.gmra.mxu0 %vm292_vm0, %v390_v3 }
  0x85   : > { %3956 = vmatmul.mubr.msk.f32.vlgmr.msra.gmra.mxu1 %vm292_vm0, %v392_v4  ;;  %3958 = vmatprep.subr.mxu0 %v4543_v0 }
  0x86   : > { %3965 = vmatprep.subr.mxu1 %v4543_v0  ;;  %3959 = vmatpush3.msra.mxu0 %v4543_v0 }
  0x87   : > { %3966 = vmatpush3.msra.mxu1 %v4543_v0  ;;  %3960 = vmatprep.subr.mxu0 %v4548_v1 }
  0x88   : > { %3967 = vmatprep.subr.mxu1 %v4548_v1  ;;  %3961 = vmatpush3.msra.mxu0 %v4548_v1 }
  0x89   : > { %3962 = vmatprep.mubr.msk.f32.mxu0 %vm292_vm0, %v393_v5  ;;  %3968 = vmatpush3.msra.mxu1 %v4548_v1 }
  0x8a   : > { %3969 = vmatprep.mubr.msk.f32.mxu1 %vm292_vm0, %v395_v6  ;;  %3963 = vmatmul.mubr.msk.f32.vlgmr.msra.gmra.mxu0 %vm292_vm0, %v394_v9  ;;  %v284_v6 = vmul.f32 %v4558_v7, %v4558_v7  ;;  %v286_v9 = vmul.f32 %v4560_v8, %v4560_v8 }
  0x8b   : > { %3970 = vmatmul.mubr.msk.f32.vlgmr.msra.gmra.mxu1 %vm292_vm0, %v396_v10  ;;  %3972 = vmatprep.subr.mxu0 %v4543_v0  ;;  %v285_v10 = vmul.f32 %v4568_v13, %v4568_v13 }
  0x8c   : > { %3979 = vmatprep.subr.mxu1 %v4543_v0  ;;  %3973 = vmatpush3.msra.mxu0 %v4543_v0 }
  0x8d   : > { %3980 = vmatpush3.msra.mxu1 %v4543_v0  ;;  %3974 = vmatprep.subr.mxu0 %v4548_v1 }
  0x8e   : > { %3981 = vmatprep.subr.mxu1 %v4548_v1  ;;  %3975 = vmatpush3.msra.mxu0 %v4548_v1 }
  0x8f   : > { %3976 = vmatprep.mubr.msk.f32.mxu0 %vm292_vm0, %v397_v11  ;;  %3982 = vmatpush3.msra.mxu1 %v4548_v1  ;;  %v293_v11 = vsel %vm292_vm0, %v284_v6, 0.0 }
  0x90   : > { %3983 = vmatprep.mubr.msk.f32.mxu1 %vm292_vm0, %v399_v14  ;;  %3977 = vmatmul.mubr.msk.f32.vlgmr.msra.gmra.mxu0 %vm292_vm0, %v398_v15  ;;  %v317_v14 = vand.u32 2147483647, %v4558_v7  ;;  %v318_v15 = vand.u32 2147483647, %v4568_v13  ;;  %v281_v7 = vsub.f32 %v4585_v20, %v4640_v43  ;;  %v288_v13 = vmul.f32 %v4618_v37, %v4618_v37 }
  0x91   : > { %3984 = vmatmul.mubr.msk.f32.vlgmr.msra.gmra.mxu1 %vm292_vm0, %v400_v16  ;;  %3986 = vmatprep.subr.mxu0 %v4543_v0  ;;  %v296_v16 = vsel %vm292_vm0, %v286_v9, 0.0  ;;  %v283_v20 = vsub.f32 %v4588_v21, %v4643_v44 }
  0x92   : > { %3993 = vmatprep.subr.mxu1 %v4543_v0  ;;  %3987 = vmatpush3.msra.mxu0 %v4543_v0 }
  0x93   : > { %3994 = vmatpush3.msra.mxu1 %v4543_v0  ;;  %3988 = vmatprep.subr.mxu0 %v4548_v1  ;;  %v4339_v0 = vmov 0.0  }
  0x94   : > { %3995 = vmatprep.subr.mxu1 %v4548_v1  ;;  %3989 = vmatpush3.msra.mxu0 %v4548_v1 }
  0x95   : > { %3990 = vmatprep.mubr.msk.f32.mxu0 %vm292_vm0, %v401_v12  ;;  %3996 = vmatpush3.msra.mxu1 %v4548_v1  ;;  %v4819_v1 = vld [vmem:[%s5047_s3] sm:$0x3f]  ;;  %v319_v12 = vand.u32 2147483647, %v4560_v8 }
  0x96   : > { %3997 = vmatprep.mubr.msk.f32.mxu1 %vm292_vm0, %v403_v17  ;;  %3991 = vmatmul.mubr.msk.f32.vlgmr.msra.gmra.mxu0 %vm292_vm0, %v402_v18  ;;  %v294_v17 = vsel %vm292_vm0, %v285_v10, 0.0 }
  0x97   : > { %3998 = vmatmul.mubr.msk.f32.vlgmr.msra.gmra.mxu1 %vm292_vm0, %v404_v22  ;;  %4000 = vmatprep.subr.mxu0 %v4339_v0  ;;  %v295_v18 = vadd.f32 %v294_v17, %v293_v11  ;;  %v325_v22 = vsel %vm292_vm0, %v317_v14, 0.0 }
  0x98   : > { %4007 = vmatprep.subr.mxu1 %v4339_v0  ;;  %4004 = vmatprep.mubr.msk.f32.mxu0 %vm4340_vm1, %v4339_v0 }
  0x99   : > { %4011 = vmatprep.mubr.msk.f32.mxu1 %vm4340_vm1, %v4339_v0 }
 0x121   : > { %v3866_v24 = vpop.f32.mrf.mxu0 }
 0x122   : > { %4001 = vmatpush3.msra.mxu0 %v3866_v24  ;;  %v3873_v26 = vpop.f32.mrf.mxu1  ;;  %v287_v24 = vmul.f32 %v4596_v23, %v4596_v23 }
 0x123   : > { %v480_v25 = vpop.f32.mrf.mxu0  ;;  %4002 = vmatprep.subr.mxu0 %v4339_v0  ;;  %4008 = vmatpush3.msra.mxu1 %v3873_v26  ;;  %v320_v26 = vand.u32 2147483647, %v4596_v23 }
 0x124   : > { %4003 = vmatpush3.msra.mxu0 %v480_v25  ;;  %v561_v27 = vpop.f32.mrf.mxu1  ;;  %4009 = vmatprep.subr.mxu1 %v4339_v0  ;;  %v328_v25 = vsel %vm292_vm0, %v319_v12, 0.0  ;;  %v298_v8 = vsel %vm292_vm0, %v287_v24, 0.0 }
 0x125   : > { %4005 = vmatmul.mubr.msk.f32.vlgmr.msra.gmra.mxu0 %vm292_vm0, %v4819_v1  ;;  %4014 = vmatprep.subr.mxu0 %v4339_v0  ;;  %v330_v23 = vsel %vm292_vm0, %v320_v26, 0.0 }
 0x126   : > { %4018 = vmatprep.mubr.msk.f32.mxu0 %vm4340_vm1, %v4339_v0  ;;  %4010 = vmatpush3.msra.mxu1 %v561_v27 }
 0x127   : > { %v3880_v28 = vpop.f32.mrf.mxu0  ;;  %v3887_v29 = vpop.f32.mrf.mxu1  ;;  %4012 = vmatmul.mubr.msk.f32.vlgmr.msra.gmra.mxu1 %vm292_vm0, %v4819_v1  ;;  %4021 = vmatprep.subr.mxu1 %v4339_v0 }
 0x128   : > { %4015 = vmatpush3.msra.mxu0 %v3880_v28  ;;  %4022 = vmatpush3.msra.mxu1 %v3887_v29  ;;  %v282_v29 = vsub.f32 %v4582_v19, %v4632_v41  ;;  %v322_v19 = vand.u32 2147483647, %v281_v7 }
 0x129   : > { %v642_v30 = vpop.f32.mrf.mxu0  ;;  %v723_v31 = vpop.f32.mrf.mxu1  ;;  %4016 = vmatprep.subr.mxu0 %v4339_v0  ;;  %4023 = vmatprep.subr.mxu1 %v4339_v0 }
 0x12a   : > { %4017 = vmatpush3.msra.mxu0 %v642_v30  ;;  %4024 = vmatpush3.msra.mxu1 %v723_v31  ;;  %v289_v30 = vmul.f32 %v281_v7, %v281_v7  ;;  %v300_v31 = vsel %vm292_vm0, %v288_v13, 0.0  ;;  %v290_v43 = vmul.f32 %v282_v29, %v282_v29  ;;  %v334_v44 = vsel %vm292_vm0, %v322_v19, 0.0 }
 0x12b   : > { %4025 = vmatprep.mubr.msk.f32.mxu1 %vm4340_vm1, %v4339_v0  ;;  %4019 = vmatmul.mubr.msk.f32.vlgmr.msra.gmra.mxu0 %vm292_vm0, %v4819_v1 }
 0x12c   : > { %v3894_v32 = vpop.f32.mrf.mxu0  ;;  %4026 = vmatmul.mubr.msk.f32.vlgmr.msra.gmra.mxu1 %vm292_vm0, %v4819_v1  ;;  %4028 = vmatprep.subr.mxu0 %v4339_v0 }
 0x12d   : > { %v3901_v33 = vpop.f32.mrf.mxu1  ;;  %4035 = vmatprep.subr.mxu1 %v4339_v0  ;;  %4029 = vmatpush3.msra.mxu0 %v3894_v32 }
 0x12e   : > { %4036 = vmatpush3.msra.mxu1 %v3901_v33  ;;  %v804_v34 = vpop.f32.mrf.mxu0  ;;  %4030 = vmatprep.subr.mxu0 %v4339_v0 }
 0x12f   : > { %v885_v35 = vpop.f32.mrf.mxu1  ;;  %4037 = vmatprep.subr.mxu1 %v4339_v0  ;;  %4031 = vmatpush3.msra.mxu0 %v804_v34  ;;  %v302_v34 = vsel %vm292_vm0, %v289_v30, 0.0 }
 0x130   : > { %4032 = vmatprep.mubr.msk.f32.mxu0 %vm4340_vm1, %v4339_v0  ;;  %4038 = vmatpush3.msra.mxu1 %v885_v35  ;;  %v321_v35 = vand.u32 2147483647, %v4618_v37 }
 0x131   : > { %4039 = vmatprep.mubr.msk.f32.mxu1 %vm4340_vm1, %v4339_v0  ;;  %4033 = vmatmul.mubr.msk.f32.vlgmr.msra.gmra.mxu0 %vm292_vm0, %v4819_v1 }
 0x132   : > { %v3908_v36 = vpop.f32.mrf.mxu0  ;;  %4040 = vmatmul.mubr.msk.f32.vlgmr.msra.gmra.mxu1 %vm292_vm0, %v4819_v1  ;;  %4042 = vmatprep.subr.mxu0 %v4339_v0 }
 0x133   : > { %v3915_v38 = vpop.f32.mrf.mxu1  ;;  %4049 = vmatprep.subr.mxu1 %v4339_v0  ;;  %4043 = vmatpush3.msra.mxu0 %v3908_v36 }
 0x134   : > { %4050 = vmatpush3.msra.mxu1 %v3915_v38  ;;  %v966_v39 = vpop.f32.mrf.mxu0  ;;  %4044 = vmatprep.subr.mxu0 %v4339_v0  ;;  %v291_v38 = vmul.f32 %v283_v20, %v283_v20 }
 0x135   : > { %v1047_v40 = vpop.f32.mrf.mxu1  ;;  %4051 = vmatprep.subr.mxu1 %v4339_v0  ;;  %4045 = vmatpush3.msra.mxu0 %v966_v39  ;;  %v304_v39 = vsel %vm292_vm0, %v290_v43, 0.0 }
 0x136   : > { %4046 = vmatprep.mubr.msk.f32.mxu0 %vm4340_vm1, %v4339_v0  ;;  %4052 = vmatpush3.msra.mxu1 %v1047_v40 }
 0x137   : > { %4053 = vmatprep.mubr.msk.f32.mxu1 %vm4340_vm1, %v4339_v0  ;;  %4047 = vmatmul.mubr.msk.f32.vlgmr.msra.gmra.mxu0 %vm292_vm0, %v4819_v1 }
 0x138   : > { %v3922_v42 = vpop.f32.mrf.mxu0  ;;  %4054 = vmatmul.mubr.msk.f32.vlgmr.msra.gmra.mxu1 %vm292_vm0, %v4819_v1  ;;  %4056 = vmatprep.subr.mxu0 %v4339_v0 }
 0x139   : > { %v3929_v45 = vpop.f32.mrf.mxu1  ;;  %4063 = vmatprep.subr.mxu1 %v4339_v0  ;;  %4057 = vmatpush3.msra.mxu0 %v3922_v42  ;;  %v332_v42 = vsel %vm292_vm0, %v321_v35, 0.0 }
 0x13a   : > { %4064 = vmatpush3.msra.mxu1 %v3929_v45  ;;  %v1128_v46 = vpop.f32.mrf.mxu0  ;;  %4058 = vmatprep.subr.mxu0 %v4339_v0  ;;  %v306_v45 = vsel %vm292_vm0, %v291_v38, 0.0 }
 0x13b   : > { %v1209_v47 = vpop.f32.mrf.mxu1  ;;  %4065 = vmatprep.subr.mxu1 %v4339_v0  ;;  %4059 = vmatpush3.msra.mxu0 %v1128_v46  ;;  %v323_v46 = vand.u32 2147483647, %v282_v29 }
 0x13c   : > { %4060 = vmatprep.mubr.msk.f32.mxu0 %vm4340_vm1, %v4339_v0  ;;  %4066 = vmatpush3.msra.mxu1 %v1209_v47 }
 0x13d   : > { %4067 = vmatprep.mubr.msk.f32.mxu1 %vm4340_vm1, %v4339_v0  ;;  %4061 = vmatmul.mubr.msk.f32.vlgmr.msra.gmra.mxu0 %vm292_vm0, %v4819_v1 }
 0x13e   : > { %v3936_v48 = vpop.f32.mrf.mxu0  ;;  %4068 = vmatmul.mubr.msk.f32.vlgmr.msra.gmra.mxu1 %vm292_vm0, %v4819_v1  ;;  %4070 = vmatprep.subr.mxu0 %v4339_v0 }
 0x13f   : > { %v3943_v49 = vpop.f32.mrf.mxu1  ;;  %4077 = vmatprep.subr.mxu1 %v4339_v0  ;;  %4071 = vmatpush3.msra.mxu0 %v3936_v48  ;;  %v324_v48 = vand.u32 2147483647, %v283_v20 }
 0x140   : > { %4078 = vmatpush3.msra.mxu1 %v3943_v49  ;;  %v1290_v50 = vpop.f32.mrf.mxu0  ;;  %4072 = vmatprep.subr.mxu0 %v4339_v0  ;;  %v336_v49 = vsel %vm292_vm0, %v323_v46, 0.0 }
 0x141   : > { %v1371_v51 = vpop.f32.mrf.mxu1  ;;  %4079 = vmatprep.subr.mxu1 %v4339_v0  ;;  %4073 = vmatpush3.msra.mxu0 %v1290_v50 }
 0x142   : > { %4074 = vmatprep.mubr.msk.f32.mxu0 %vm4340_vm1, %v4339_v0  ;;  %4080 = vmatpush3.msra.mxu1 %v1371_v51  ;;  %v338_v51 = vsel %vm292_vm0, %v324_v48, 0.0 }
 0x143   : > { %4081 = vmatprep.mubr.msk.f32.mxu1 %vm4340_vm1, %v4339_v0  ;;  %4075 = vmatmul.mubr.msk.f32.vlgmr.msra.gmra.mxu0 %vm292_vm0, %v4819_v1 }
 0x144   : > { %v3950_v52 = vpop.f32.mrf.mxu0  ;;  %4082 = vmatmul.mubr.msk.f32.vlgmr.msra.gmra.mxu1 %vm292_vm0, %v4819_v1  ;;  %4084 = vmatprep.subr.mxu0 %v4339_v0 }
 0x145   : > { %v3957_v53 = vpop.f32.mrf.mxu1  ;;  %4091 = vmatprep.subr.mxu1 %v4339_v0  ;;  %4085 = vmatpush3.msra.mxu0 %v3950_v52 }
 0x146   : > { %4092 = vmatpush3.msra.mxu1 %v3957_v53  ;;  %v1452_v54 = vpop.f32.mrf.mxu0  ;;  %4086 = vmatprep.subr.mxu0 %v4339_v0 }
 0x147   : > { %v1533_v55 = vpop.f32.mrf.mxu1  ;;  %4093 = vmatprep.subr.mxu1 %v4339_v0  ;;  %4087 = vmatpush3.msra.mxu0 %v1452_v54 }
 0x148   : > { %4088 = vmatprep.mubr.msk.f32.mxu0 %vm4340_vm1, %v4339_v0  ;;  %4094 = vmatpush3.msra.mxu1 %v1533_v55 }
 0x149   : > { %4095 = vmatprep.mubr.msk.f32.mxu1 %vm4340_vm1, %v4339_v0  ;;  %4089 = vmatmul.mubr.msk.f32.vlgmr.msra.gmra.mxu0 %vm292_vm0, %v4819_v1 }
 0x14a   : > { %v3964_v56 = vpop.f32.mrf.mxu0  ;;  %4096 = vmatmul.mubr.msk.f32.vlgmr.msra.gmra.mxu1 %vm292_vm0, %v4819_v1  ;;  %4098 = vmatprep.subr.mxu0 %v4339_v0 }
 0x14b   : > { %v3971_v57 = vpop.f32.mrf.mxu1  ;;  %4105 = vmatprep.subr.mxu1 %v4339_v0  ;;  %4099 = vmatpush3.msra.mxu0 %v3964_v56 }
 0x14c   : > { %4106 = vmatpush3.msra.mxu1 %v3971_v57  ;;  %v1614_v58 = vpop.f32.mrf.mxu0  ;;  %4100 = vmatprep.subr.mxu0 %v4339_v0 }
 0x14d   : > { %v1695_v59 = vpop.f32.mrf.mxu1  ;;  %4107 = vmatprep.subr.mxu1 %v4339_v0  ;;  %4101 = vmatpush3.msra.mxu0 %v1614_v58 }
 0x14e   : > { %4102 = vmatprep.mubr.msk.f32.mxu0 %vm4340_vm1, %v4339_v0  ;;  %4108 = vmatpush3.msra.mxu1 %v1695_v59 }
 0x14f   : > { %4109 = vmatprep.mubr.msk.f32.mxu1 %vm4340_vm1, %v4339_v0  ;;  %4103 = vmatmul.mubr.msk.f32.vlgmr.msra.gmra.mxu0 %vm292_vm0, %v4819_v1 }
 0x150   : > { %v3978_v60 = vpop.f32.mrf.mxu0  ;;  %4110 = vmatmul.mubr.msk.f32.vlgmr.msra.gmra.mxu1 %vm292_vm0, %v4819_v1  ;;  %4112 = vmatprep.subr.mxu0 %v4339_v0 }
 0x151   : > { %v3985_v61 = vpop.f32.mrf.mxu1  ;;  %4119 = vmatprep.subr.mxu1 %v4339_v0  ;;  %4113 = vmatpush3.msra.mxu0 %v3978_v60 }
 0x152   : > { %4120 = vmatpush3.msra.mxu1 %v3985_v61  ;;  %v1776_v62 = vpop.f32.mrf.mxu0  ;;  %4114 = vmatprep.subr.mxu0 %v4339_v0 }
 0x153   : > { %v1857_v63 = vpop.f32.mrf.mxu1  ;;  %4121 = vmatprep.subr.mxu1 %v4339_v0  ;;  %4115 = vmatpush3.msra.mxu0 %v1776_v62 }
 0x154   : > { %4116 = vmatprep.mubr.msk.f32.mxu0 %vm4340_vm1, %v4339_v0  ;;  %4122 = vmatpush3.msra.mxu1 %v1857_v63 }
 0x155   : > { %4123 = vmatprep.mubr.msk.f32.mxu1 %vm4340_vm1, %v4339_v0  ;;  %4117 = vmatmul.mubr.msk.f32.vlgmr.msra.gmra.mxu0 %vm292_vm0, %v4819_v1 }
 0x156   : > { %v3992_v2 = vpop.f32.mrf.mxu0  ;;  %4124 = vmatmul.mubr.msk.f32.vlgmr.msra.gmra.mxu1 %vm292_vm0, %v4819_v1  ;;  %4126 = vmatprep.subr.mxu0 %v4339_v0 }
 0x157   : > { %v3999_v3 = vpop.f32.mrf.mxu1  ;;  %4133 = vmatprep.subr.mxu1 %v4339_v0  ;;  %4127 = vmatpush3.msra.mxu0 %v3992_v2 }
 0x158   : > { %4134 = vmatpush3.msra.mxu1 %v3999_v3  ;;  %v1938_v4 = vpop.f32.mrf.mxu0  ;;  %4128 = vmatprep.subr.mxu0 %v4339_v0 }
 0x159   : > { %v2019_v5 = vpop.f32.mrf.mxu1  ;;  %4135 = vmatprep.subr.mxu1 %v4339_v0  ;;  %4129 = vmatpush3.msra.mxu0 %v1938_v4 }
 0x15a   : > { %4130 = vmatprep.mubr.msk.f32.mxu0 %vm4340_vm1, %v4339_v0  ;;  %4136 = vmatpush3.msra.mxu1 %v2019_v5 }
 0x15b   : > { %4137 = vmatprep.mubr.msk.f32.mxu1 %vm4340_vm1, %v4339_v0  ;;  %4131 = vmatmul.mubr.msk.f32.vlgmr.msra.gmra.mxu0 %vm292_vm0, %v4819_v1  ;;  %v326_v0 = vsel %vm292_vm0, %v318_v15, 0.0 }
 0x15c   : > { %4138 = vmatmul.mubr.msk.f32.vlgmr.msra.gmra.mxu1 %vm292_vm0, %v4819_v1  ;;  %v297_v1 = vadd.f32 %v296_v16, %v295_v18  ;;  %v327_v28 = vadd.f32 %v326_v0, %v325_v22 }
 0x15e   : > { %v299_v27 = vadd.f32 %v298_v8, %v297_v1  ;;  %v329_v33 = vadd.f32 %v328_v25, %v327_v28 }
 0x160   : > { %v301_v32 = vadd.f32 %v300_v31, %v299_v27  ;;  %v331_v41 = vadd.f32 %v330_v23, %v329_v33 }
 0x162   : > { %v303_v36 = vadd.f32 %v302_v34, %v301_v32  ;;  %v333_v21 = vadd.f32 %v332_v42, %v331_v41 }
 0x164   : > { %v305_v40 = vadd.f32 %v304_v39, %v303_v36  ;;  %v335_v37 = vadd.f32 %v334_v44, %v333_v21 }
 0x166   : > { %v307_v47 = vadd.f32 %v306_v45, %v305_v40  ;;  %v337_v50 = vadd.f32 %v336_v49, %v335_v37 }
 0x168   : > { %308 = vadd.xlane.f32.xlu0 %v307_v47  ;;  %v339_v52 = vadd.f32 %v338_v51, %v337_v50 }
 0x16c   : > { %340 = vadd.xlane.f32.xlu0 %v339_v52 }
 0x1e5   : > { %v4972_v53 = vpop.f32.mrf.mxu0 }
 0x1e6   : > { %v3431_v0 = vmul.f32 %v4972_v53, %v4972_v53 }
 0x1e7   : > { %v4006_v54 = vpop.f32.mrf.mxu0  ;;  %v4974_v55 = vpop.f32.mrf.mxu1 }
 0x1e8   : > { %v3432_v24 = vmul.f32 %v4974_v55, %v4974_v55 }
 0x1e9   : > { %v4013_v56 = vpop.f32.mrf.mxu1 }
 0x1eb   : > { %v4976_v57 = vpop.f32.mrf.mxu0 }
 0x1ec   : > { %v4978_v58 = vpop.f32.mrf.mxu1  ;;  %v3433_v43 = vmul.f32 %v4976_v57, %v4976_v57 }
 0x1ed   : > { %v4020_v59 = vpop.f32.mrf.mxu0  ;;  %v3434_v36 = vmul.f32 %v4978_v58, %v4978_v58 }
 0x1ee   : > { %v4027_v60 = vpop.f32.mrf.mxu1 }
 0x1f1   : > { %v2377_v61 = vpop.f32.mrf.mxu0 }
 0x1f2   : > { %v2447_v62 = vpop.f32.mrf.mxu1  ;;  %v3435_v17 = vmul.f32 %v2377_v61, %v2377_v61  ;;  %v3439_v51 = vmul.f32 %v2377_v61, %v4972_v53 }
 0x1f3   : > { %v4034_v63 = vpop.f32.mrf.mxu0  ;;  %v3436_v22 = vmul.f32 %v2447_v62, %v2447_v62  ;;  %v3440_v56 = vmul.f32 %v2447_v62, %v4974_v55 }
 0x1f4   : > { %v4041_v2 = vpop.f32.mrf.mxu1  ;;  %v3475_v25 = vadd.f32 %v3435_v17, %v3431_v0 }
 0x1f5   : > { %v3476_v26 = vadd.f32 %v3436_v22, %v3432_v24 }
 0x1f6   : > { %v3479_v34 = vadd.f32 0.0001, %v3475_v25 }
 0x1f7   : > { %v4980_v3 = vpop.f32.mrf.mxu0  ;;  %v3480_v23 = vadd.f32 0.0001, %v3476_v26 }
 0x1f8   : > { %v4982_v4 = vpop.f32.mrf.mxu1  ;;  %v3437_v30 = vmul.f32 %v4980_v3, %v4980_v3  ;;  %v3441_v61 = vmul.f32 %v4980_v3, %v4976_v57 }
 0x1f9   : > { %v4048_v5 = vpop.f32.mrf.mxu0  ;;  %v3438_v33 = vmul.f32 %v4982_v4, %v4982_v4  ;;  %v3442_v62 = vmul.f32 %v4982_v4, %v4978_v58 }
 0x1fa   : > { %v4055_v6 = vpop.f32.mrf.mxu1  ;;  %v3477_v19 = vadd.f32 %v3437_v30, %v3433_v43 }
 0x1fb   : > { %v3478_v46 = vadd.f32 %v3438_v33, %v3434_v36 }
 0x1fc   : > { %v3481_v52 = vadd.f32 0.0001, %v3477_v19 }
 0x1fd   : > { %v2657_v9 = vpop.f32.mrf.mxu0  ;;  %v3482_v59 = vadd.f32 0.0001, %v3478_v46 }
 0x1fe   : > { %v2727_v10 = vpop.f32.mrf.mxu1  ;;  %v3443_v7 = vsub.f32 %v2657_v9, %v3431_v0 }
 0x1ff   : > { %v4062_v11 = vpop.f32.mrf.mxu0  ;;  %v3444_v27 = vsub.f32 %v2727_v10, %v3432_v24 }
 0x200   : > { %v4069_v14 = vpop.f32.mrf.mxu1 }
 0x201   : > { %v3455_v14 = vmul.f32 2.0, %v3439_v51 }
 0x203   : > { %v2797_v15 = vpop.f32.mrf.mxu0 }
 0x204   : > { %v2867_v16 = vpop.f32.mrf.mxu1  ;;  %v3445_v41 = vsub.f32 %v2797_v15, %v3433_v43 }
 0x205   : > { %v4076_v12 = vpop.f32.mrf.mxu0  ;;  %v3446_v21 = vsub.f32 %v2867_v16, %v3434_v36 }
 0x206   : > { %v4083_v18 = vpop.f32.mrf.mxu1  ;;  %v3456_v12 = vmul.f32 2.0, %v3440_v56 }
 0x209   : > { %v2937_v1 = vpop.f32.mrf.mxu0 }
 0x20a   : > { %v3447_v13 = vsub.f32 %v2937_v1, %v3435_v17  ;;  %v3007_v8 = vpop.f32.mrf.mxu1  ;;  %v3460_v1 = vadd.f32 0.0001, %v3456_v12 }
 0x20b   : > { %v3448_v28 = vsub.f32 %v3007_v8, %v3436_v22  ;;  %v4090_v29 = vpop.f32.mrf.mxu0  ;;  %v3459_v22 = vadd.f32 0.0001, %v3455_v14 }
 0x20c   : > { %v3483_v31 = vadd.f32 %v3447_v13, %v3443_v7  ;;  %v4097_v32 = vpop.f32.mrf.mxu1  ;;  %v3457_v13 = vmul.f32 2.0, %v3441_v61  ;;  %v3458_v29 = vmul.f32 2.0, %v3442_v62 }
 0x20d   : > { %v3484_v20 = vadd.f32 %v3448_v28, %v3444_v27 }
 0x20e   : > { %v3487_v35 = vadd.f32 0.0009, %v3483_v31 }
 0x20f   : > { %v3488_v38 = vadd.f32 0.0009, %v3484_v20  ;;  %v3077_v39 = vpop.f32.mrf.mxu0  ;;  %v3462_v20 = vadd.f32 0.0001, %v3458_v29 }
 0x210   : > { %v3491_v40 = vmul.f32 %v3487_v35, %v3479_v34  ;;  %v3449_v42 = vsub.f32 %v3077_v39, %v3437_v30  ;;  %v3147_v45 = vpop.f32.mrf.mxu1 }
 0x211   : > { %v3492_v44 = vmul.f32 %v3488_v38, %v3480_v23  ;;  %v3450_v47 = vsub.f32 %v3147_v45, %v3438_v33  ;;  %v4104_v48 = vpop.f32.mrf.mxu0  ;;  %v3461_v33 = vadd.f32 0.0001, %v3457_v13 }
 0x212   : > { %4201 = vrcp.f32 %v3491_v40  ;;  %v3485_v37 = vadd.f32 %v3449_v42, %v3445_v41  ;;  %v4111_v49 = vpop.f32.mrf.mxu1 }
 0x213   : > { %4203 = vrcp.f32 %v3492_v44  ;;  %v3486_v50 = vadd.f32 %v3450_v47, %v3446_v21  ;;  %v309_v21 = vpop.xlane.xlu0 %308 }
 0x214   : > { %v3489_v54 = vadd.f32 0.0009, %v3485_v37  ;;  %v310_v44 = vrot.slane %v309_v21, 4 }
 0x215   : > { %v3490_v60 = vadd.f32 0.0009, %v3486_v50  ;;  %v3217_v63 = vpop.f32.mrf.mxu0 }
 0x216   : > { %v3493_v2 = vmul.f32 %v3489_v54, %v3481_v52  ;;  %v3451_v5 = vsub.f32 %v3217_v63, %v3439_v51  ;;  %v3287_v6 = vpop.f32.mrf.mxu1  ;;  %v311_v47 = vadd.f32 %v310_v44, %v309_v21 }
 0x217   : > { %v3494_v9 = vmul.f32 %v3490_v60, %v3482_v59  ;;  %v3452_v10 = vsub.f32 %v3287_v6, %v3440_v56  ;;  %v4118_v11 = vpop.f32.mrf.mxu0  ;;  %v341_v48 = vpop.xlane.xlu0 %340 }
 0x218   : > { %4205 = vrcp.f32 %v3493_v2  ;;  %v3463_v15 = vmul.f32 2.0, %v3451_v5  ;;  %v4125_v16 = vpop.f32.mrf.mxu1  ;;  %v342_v37 = vrot.slane %v341_v48, 4  ;;  %v312_v49 = vrot.slane %v311_v47, 2 }
 0x219   : > { %4207 = vrcp.f32 %v3494_v9  ;;  %v3464_v53 = vmul.f32 2.0, %v3452_v10 }
 0x21a   : > { %v3467_v55 = vadd.f32 0.0009, %v3463_v15  ;;  %v343_v50 = vadd.f32 %v342_v37, %v341_v48  ;;  %v313_v52 = vadd.f32 %v312_v49, %v311_v47 }
 0x21b   : > { %v3468_v17 = vadd.f32 0.0009, %v3464_v53  ;;  %v3357_v18 = vpop.f32.mrf.mxu0 }
 0x21c   : > { %v3453_v0 = vsub.f32 %v3357_v18, %v3441_v61  ;;  %v3427_v24 = vpop.f32.mrf.mxu1  ;;  %v3471_v8 = vmul.f32 %v3467_v55, %v3459_v22  ;;  %v344_v51 = vrot.slane %v343_v50, 2  ;;  %v314_v56 = vrot.slane %v313_v52, 1 }
 0x21d   : > { %v3454_v25 = vsub.f32 %v3427_v24, %v3442_v62  ;;  %v4132_v7 = vpop.f32.mrf.mxu0  ;;  %v3472_v30 = vmul.f32 %v3468_v17, %v3460_v1 }
 0x21e   : > { %v3465_v26 = vmul.f32 2.0, %v3453_v0  ;;  %v4139_v27 = vpop.f32.mrf.mxu1  ;;  %v345_v54 = vadd.f32 %v344_v51, %v343_v50  ;;  %v315_v60 = vadd.f32 %v314_v56, %v313_v52 }
 0x21f   : > { %v4202_v28 = vpop.eup %4201  ;;  %v3466_v57 = vmul.f32 2.0, %v3454_v25 }
 0x220   : > { %v4204_v3 = vpop.eup %4203  ;;  %v3496_v31 = vmul.f32 %v4202_v28, %v3471_v8  ;;  %v3469_v32 = vadd.f32 0.0009, %v3465_v26  ;;  %v346_v59 = vrot.slane %v345_v54, 1  ;;  %4140 = vpush %v315_v60 }
 0x221   : > { %v3498_v58 = vmul.f32 %v4204_v3, %v3472_v30  ;;  %v3470_v4 = vadd.f32 0.0009, %v3466_v57 }
 0x222   : > { %v3473_v43 = vmul.f32 %v3469_v32, %v3461_v33  ;;  %v3504_v34 = vsel %vm3503_vm2, %v3496_v31, 0.0  ;;  %v347_v63 = vadd.f32 %v346_v59, %v345_v54 }
 0x223   : > { %v3505_v35 = vsel %vm3503_vm2, %v3498_v58, 0.0  ;;  %v3474_v23 = vmul.f32 %v3470_v4, %v3462_v20 }
 0x224   : > { %v3506_v41 = vadd.f32 %v3505_v35, %v3504_v34  ;;  %4142 = vpush %v347_v63 }
 0x225   : > { %v4206_v36 = vpop.eup %4205 }
 0x226   : > { %v4208_v38 = vpop.eup %4207  ;;  %v3500_v39 = vmul.f32 %v4206_v36, %v3473_v43 }
 0x227   : > { %v3502_v19 = vmul.f32 %v4208_v38, %v3474_v23 }
 0x228   : > { %v3507_v40 = vsel %vm3503_vm2, %v3500_v39, 0.0 }
 0x229   : > { %v3508_v42 = vadd.f32 %v3507_v40, %v3506_v41  ;;  %v3509_v45 = vsel %vm3503_vm2, %v3502_v19, 0.0 }
 0x22b   : > { %v3510_v46 = vadd.f32 %v3509_v45, %v3508_v42 }
 0x22d   : > { %3511 = vadd.xlane.f32.xlu1 %v3510_v46 }
 0x251   : > { %s4141_s25 = spop %4140 }
 0x252   : > { %s3520_s5 = smul.f32 0.5, %s4141_s25  ;;  %s3531_s25 = scalar_lea.sflag [#allocation4], %s4523_s10 }
 0x254   : > { %s3521_s12 = smul.f32 0.00048828125, %s3520_s5  ;;  %s4341_s5 = smov [#allocation7]  }
 0x255   : > { %s4143_s29 = spop %4142  ;;  %s4269_s19 = sshll.u32 %s4341_s5, 4  ;;  %s4270_s19 = int_to_ptr.vmem [resolvable:$false] %s4269_s19 }
 0x256   : > { %s3522_s7 = smul.f32 0.3, %s4143_s29  ;;  %s4265_s29 = scalar_lea.vmem %s3545_s9, 128 }
 0x257   : > { %p4266_p13 = scmp.ne.s32.totalorder %s3545_s9, %s4265_s29  ;;  %p4272_p10 = scmp.lt.s32.totalorder %s3545_s9, %s4270_s19 }
 0x258   : > { %s3523_s30 = smul.f32 0.00048828125, %s3522_s7  ;;  %s4271_s7 = scalar_lea.vmem %s4270_s19, 256 }
 0x259   : > { %p4267_p12 = pnand %p4266_p13, %p5062_p1  ;;  %p4273_p0 = scmp.lt.s32.totalorder %s4271_s7, %s4265_s29 }
 0x25a   : > { %s3524_s13 = sadd.f32 %s3523_s30, %s3521_s12 }
 0x25b   : > { %p4268_p7 = pneg %p4267_p12  ;;  %p4274_p2 = por %p4273_p0, %p4272_p10 }
 0x25d   : > { %p4275_p4 = pnand %p4274_p2, %p4268_p7 }
 0x2b6   : > { %v3512_v2 = vpop.xlane.xlu1 %3511 }
 0x2b7   : > { %v3513_v5 = vrot.slane %v3512_v2, 4 }
 0x2b9   : > { %v3514_v6 = vadd.f32 %v3513_v5, %v3512_v2 }
 0x2bb   : > { %v3515_v9 = vrot.slane %v3514_v6, 2 }
 0x2bd   : > { %v3516_v10 = vadd.f32 %v3515_v9, %v3514_v6 }
 0x2bf   : > { %v3517_v11 = vrot.slane %v3516_v10, 1 }
 0x2c1   : > { %v3518_v14 = vadd.f32 %v3517_v11, %v3516_v10 }
 0x2c3   : > { %4144 = vpush %v3518_v14 }
 0x2f4   : > { %s4145_s23 = spop %4144 }
 0x2f5   : > { %s3525_s11 = smul.f32 0.2, %s4145_s23 }
 0x2f7   : > { %s3526_s22 = smul.f32 0.0034722222, %s3525_s11 }
 0x2f9   : > { %s3527_s26 = ssub.f32 %s3524_s13, %s3526_s22 }
 0x2fb   : > { %v3528_v15 = vstv %s3527_s26 }
 0x2fc   : > { %3529 = vst [vmem:[%s257_s6] sm:$0xff] %v3528_v15 }
 0x2fd   : > { %4278 = shalt.err (!%p4275_p4)
}
 0x2fe   : > { %s4279_s0 = scalar_lea.hbm %s5007_s1, 128  ;;  %s4283_s14 = scalar_lea.hbm %s5048_s4, 256 }
 0x2ff   : > { %p4280_p9 = scmp.ne.s32.totalorder %s5007_s1, %s4279_s0  ;;  %p4284_p5 = scmp.lt.s32.totalorder %s5007_s1, %s5048_s4 }
 0x300   : > { %p4285_p8 = scmp.lt.s32.totalorder %s4283_s14, %s4279_s0 }
 0x301   : > { %p4281_p11 = pnand %p4280_p9, %p5062_p1 }
 0x302   : > { %p4286_p6 = por %p4285_p8, %p4284_p5 }
 0x303   : > { %p4282_p3 = pneg %p4281_p11 }
 0x305   : > { %p4287_p13 = pnand %p4286_p6, %p4282_p3 }
 0x307   : > { %4290 = shalt.err (!%p4287_p13)
}
 0x308   : > { %4150 = dma.vmem_to_hbm [thread:$0]  (%p5062_p1), %s3545_s9, 128, %s5007_s1, %s3531_s25  }
 0x309 PF: > { %s3556_s11 = sand.u32 1, %s4321_s15   ;;  %p5063_p12 = scmp.ne.s32.totalorder %s5056_s28, 0 }
 0x30a   : > { %p5064_p7 = scmp.ge.s32.totalorder %s4333_s18, 2  ;;  %s3557_s13 = scalar_lea.sflag [#allocation4], %s3556_s11 }
 0x30c   : > { %p4160_p10 = pnand %p5064_p7, %p5063_p12 }
 0x30e   : > { %p4161_p0 = pneg %p4160_p10 }
 0x310   : > { %4316 = dma.done.wait (%p4161_p0), %s3557_s13, 128  }
 0x311   : > { %4318 = vsyncadd (%p4161_p0), %s3557_s13, 4294967168  ;;  %p20_p2 = scmp.ge.s32.totalorder %s4392_s21, 4   ;;  %s5065_s15 = smov %s4325_s16 }
 0x312   : > { %s5066_s16 = smov %s4329_s17  ;;  %s5067_s17 = smov %s4404_s24 }
 0x313   : > { %s5068_s18 = smov %s4392_s21  ;;  %22 = sbr.rel (!%p20_p2) target bundleno = 10 (0xa), region = 94 }
 0x318   :  { %3562 = vsyncpa [#allocation3], 1 }
 0x319   :  { %3564 = vsyncpa [#allocation3 + $0x1], 1 }
 0x31a   :  { %3565 = vsyncpa [#allocation6], 1 }
 0x31b   :  { %3567 = vsyncpa [#allocation6 + $0x1], 1 }
 0x31c   :  { %3568 = vsyncpa [#allocation4], 1 }
 0x31d   :  { %3570 = vsyncpa [#allocation4 + $0x1], 1 }

</bundles_post_ra>
